<compile_context>
chip_gen: v6e
topology: v6e:2x2x1
jax: 0.10.0
libtpu: 0.0.40
codegen_flags: <defaults>
</compile_context>

<pallas_src>
import functools
import math

import jax
import jax.numpy as jnp
from jax.experimental import pallas as pl
from jax.experimental.pallas import tpu as pltpu

EPS = 1e-5


def _round_up(x, m):
    return ((x + m - 1) // m) * m


# ---------------------------------------------------------------------------
# Pallas kernel: single-shot GEMM with fused bias (+ residual) (+ relu)
# ---------------------------------------------------------------------------
def _gemm_bias_kernel(*refs, relu, has_residual):
    if has_residual:
        a_ref, b_ref, c_ref, r_ref, o_ref = refs
    else:
        a_ref, b_ref, c_ref, o_ref = refs
        r_ref = None
    # Whole-K bf16 matmul, f32 accumulation on the MXU.
    y = jnp.dot(a_ref[...], b_ref[...], preferred_element_type=jnp.float32)
    y = y + c_ref[...]
    if r_ref is not None:
        y = y + r_ref[...]
    if relu:
        y = jnp.maximum(y, 0.0)
    o_ref[...] = y


def fused_gemm(a, w_p, bias_p, n_out, *, relu=False, residual=None):
    """out = maybe_relu(a @ w_p + bias_p [+ residual]); returns (M, n_out) f32.

    a:       (M, K)   activations (any float dtype; cast to bf16 here)
    w_p:     (Kp, Np) pre-padded bf16 weights (BN scale already folded in)
    bias_p:  (1, Np)  pre-padded f32 bias
    """
    M, K = a.shape
    Kp, Np = w_p.shape
    TM = _round_up(M, 16)          # bf16 sublane packing needs multiples of 16
    TN = min(256, Np)              # lane-dense; 2 parallel blocks when Np=512

    a_p = jnp.zeros((TM, Kp), jnp.bfloat16).at[:M, :K].set(
        a.astype(jnp.bfloat16))

    inputs = [a_p, w_p, bias_p]
    in_specs = [
        pl.BlockSpec((TM, Kp), lambda j: (0, 0)),   # full-K A block
        pl.BlockSpec((Kp, TN), lambda j: (0, j)),   # full-K B column tile
        pl.BlockSpec((1, TN), lambda j: (0, j)),    # bias
    ]
    has_residual = residual is not None
    if has_residual:
        r_p = jnp.zeros((TM, Np), jnp.float32).at[:M, :n_out].set(
            residual.astype(jnp.float32))
        inputs.append(r_p)
        in_specs.append(pl.BlockSpec((TM, TN), lambda j: (0, j)))

    out = pl.pallas_call(
        functools.partial(_gemm_bias_kernel, relu=relu,
                          has_residual=has_residual),
        out_shape=jax.ShapeDtypeStruct((TM, Np), jnp.float32),
        grid_spec=pltpu.PrefetchScalarGridSpec(
            num_scalar_prefetch=0,
            grid=(Np // TN,),
            in_specs=in_specs,
            out_specs=pl.BlockSpec((TM, TN), lambda j: (0, j)),
        ),
        compiler_params=pltpu.CompilerParams(
            dimension_semantics=("parallel",),
            vmem_limit_bytes=32 * 1024 * 1024,      # fits v7x's 64 MiB VMEM
        ),
    )(*inputs)
    return out[:M, :n_out]


# ---------------------------------------------------------------------------
# JAX glue: im2col + layer wrappers
# ---------------------------------------------------------------------------
def _im2col3x3(x, stride):
    """x: (N,H,W,C) -> patches (N*Ho*Wo, 9*C), column order (kh, kw, c)."""
    N, H, W, C = x.shape
    Ho = (H + 2 - 3) // stride + 1
    Wo = (W + 2 - 3) // stride + 1
    xp = jnp.pad(x, ((0, 0), (1, 1), (1, 1), (0, 0)))
    cols = []
    for kh in range(3):
        for kw in range(3):
            cols.append(xp[:, kh:kh + stride * Ho:stride,
                           kw:kw + stride * Wo:stride, :])
    patches = jnp.stack(cols, axis=3)                 # (N,Ho,Wo,9,C)
    return patches.reshape(N * Ho * Wo, 9 * C), Ho, Wo


def conv3x3_bn(x, params, stride, relu, residual=None):
    w_p, b_p, n_out = params
    N = x.shape[0]
    # im2col in bf16 to halve the 9x-duplicated glue traffic.
    patches, Ho, Wo = _im2col3x3(x.astype(jnp.bfloat16), stride)
    res_flat = None
    if residual is not None:
        res_flat = residual.reshape(N * Ho * Wo, residual.shape[-1])
    out = fused_gemm(patches, w_p, b_p, n_out, relu=relu, residual=res_flat)
    return out.reshape(N, Ho, Wo, n_out)


def conv1x1_bn(x, params, stride):
    w_p, b_p, n_out = params
    xs = x[:, ::stride, ::stride, :].astype(jnp.bfloat16)
    N, Ho, Wo, Cin = xs.shape
    out = fused_gemm(xs.reshape(N * Ho * Wo, Cin), w_p, b_p, n_out, relu=False)
    return out.reshape(N, Ho, Wo, n_out)


def resblock_fwd(x, p):
    if p["trans"] is not None:
        x_ch = conv1x1_bn(x, p["trans"], p["stride"])
    else:
        x_ch = x
    x_pro = conv3x3_bn(x, p["conv1"], p["stride"], relu=True)
    # No ReLU after the residual add (matches the reference module).
    out = conv3x3_bn(x_pro, p["conv2"], 1, relu=False, residual=x_ch)
    return out


def resnet_forward(x_nchw, params):
    x = jnp.transpose(x_nchw, (0, 2, 3, 1))           # NCHW -> NHWC
    x = conv3x3_bn(x, params["conv1"], 1, relu=True)  # conv_1 + BN + ReLU
    x = resblock_fwd(x, params["block1"])
    x = resblock_fwd(x, params["block2"])
    x = resblock_fwd(x, params["block3"])
    x = resblock_fwd(x, params["block4"])
    x = jnp.mean(x, axis=(1, 2))                      # adaptive_avg_pool2d -> (N, 512)
    w, b = params["out"]                              # linear 512 -> 10
    return jnp.dot(x, w.T) + b                        # tiny: plain XLA dot


# ---------------------------------------------------------------------------
# Deterministic parameter construction (weights pre-folded, pre-padded, bf16)
# ---------------------------------------------------------------------------
def _make_conv_bn(key, cin, cout, ksize):
    k = jax.random.split(key, 6)
    fan_in = cin * ksize * ksize
    w = jax.random.normal(k[0], (cout, cin, ksize, ksize), jnp.float32) / math.sqrt(fan_in)
    cb = 0.01 * jax.random.normal(k[1], (cout,), jnp.float32)
    gamma = 1.0 + 0.1 * jax.random.normal(k[2], (cout,), jnp.float32)
    beta = 0.1 * jax.random.normal(k[3], (cout,), jnp.float32)
    rmean = 0.1 * jax.random.normal(k[4], (cout,), jnp.float32)
    rvar = jax.random.uniform(k[5], (cout,), jnp.float32, 0.5, 1.5)
    scale = gamma / jnp.sqrt(rvar + EPS)
    bias = (cb - rmean) * scale + beta
    # weight (Cout,Cin,kh,kw) -> (kh,kw,Cin,Cout) -> (kh*kw*Cin, Cout)
    w_mat = jnp.transpose(w, (2, 3, 1, 0)).reshape(ksize * ksize * cin, cout)
    # Fold BN scale into the weight columns (per output channel).
    w_mat = w_mat * scale[None, :]
    K, N = w_mat.shape
    Kp = _round_up(K, 128)
    Np = _round_up(N, 128)
    w_p = jnp.zeros((Kp, Np), jnp.bfloat16).at[:K, :N].set(
        w_mat.astype(jnp.bfloat16))
    b_p = jnp.zeros((1, Np), jnp.float32).at[0, :N].set(bias)
    return (w_p, b_p, N)


def _make_block(key, cin, cout, stride):
    k1, k2, k3 = jax.random.split(key, 3)
    trans = _make_conv_bn(k3, cin, cout, 1) if cin != cout else None
    return {
        "conv1": _make_conv_bn(k1, cin, cout, 3),
        "conv2": _make_conv_bn(k2, cout, cout, 3),
        "trans": trans,
        "stride": stride,
    }


def make_params(key):
    ks = jax.random.split(key, 7)
    wo = jax.random.normal(ks[5], (10, 512), jnp.float32) / math.sqrt(512)
    bo = 0.01 * jax.random.normal(ks[6], (10,), jnp.float32)
    return {
        "conv1": _make_conv_bn(ks[0], 3, 64, 3),
        "block1": _make_block(ks[1], 64, 128, 2),
        "block2": _make_block(ks[2], 128, 256, 2),
        "block3": _make_block(ks[3], 256, 512, 1),
        "block4": _make_block(ks[4], 512, 512, 1),
        "out": (wo, bo),
    }


if __name__ == "__main__":
    root = jax.random.PRNGKey(0)
    k_params, k_x = jax.random.split(root)
    params = make_params(k_params)
    x = jax.random.normal(k_x, (2, 3, 16, 16), jnp.float32)   # NCHW, small spatial
    out = resnet_forward(x, params)
    out = jax.block_until_ready(out)
    assert out.shape == (2, 10), out.shape
    assert jnp.all(jnp.isfinite(out))
    print("KERNEL_OK")
</pallas_src>

<mosaic_0001>
module attributes {stable_mosaic.version = 11 : i64} {
  func.func @_gemm_bias_kernel(%arg0: i32, %arg1: memref<512x128xbf16, #tpu.memory_space<vmem>>, %arg2: memref<128x128xbf16, #tpu.memory_space<vmem>>, %arg3: memref<1x128xf32, #tpu.memory_space<vmem>>, %arg4: memref<512x128xf32, #tpu.memory_space<vmem>>) attributes {dimension_semantics = [#tpu.dimension_semantics<parallel>], iteration_bounds = array<i64: 1>, scalar_prefetch = 0 : i64, scratch_operands = 0 : i64, tpu.core_type = #tpu.core_type<tc>, window_params = [{pipeline_mode = #tpu.pipeline_mode<synchronous>, transform_indices = @transform_0, window_bounds = array<i64: 512, 128>}, {transform_indices = @transform_1, window_bounds = array<i64: 128, 128>}, {transform_indices = @transform_2, window_bounds = array<i64: 1, 128>}, {transform_indices = @transform_3, window_bounds = array<i64: 512, 128>}]} {
    %c0 = arith.constant 0 : index
    %c0_0 = arith.constant 0 : index
    %0 = vector.load %arg1[%c0, %c0_0] : memref<512x128xbf16, #tpu.memory_space<vmem>>, vector<512x128xbf16>
    %c0_1 = arith.constant 0 : index
    %c0_2 = arith.constant 0 : index
    %1 = vector.load %arg2[%c0_1, %c0_2] : memref<128x128xbf16, #tpu.memory_space<vmem>>, vector<128x128xbf16>
    %cst = arith.constant dense<0.000000e+00> : vector<512x128xf32>
    %2 = tpu.matmul %0, %1, %cst {dimension_numbers = #tpu.dot_dimension_numbers<[1], [0], [0], [1], [0, 0, 1, 1], [], []>} : vector<512x128xbf16>, vector<128x128xbf16>, vector<512x128xf32> -> vector<512x128xf32>
    %c0_3 = arith.constant 0 : index
    %c0_4 = arith.constant 0 : index
    %3 = vector.load %arg3[%c0_3, %c0_4] : memref<1x128xf32, #tpu.memory_space<vmem>>, vector<1x128xf32>
    %4 = vector.broadcast %3 : vector<1x128xf32> to vector<512x128xf32>
    %5 = arith.addf %2, %4 : vector<512x128xf32>
    %cst_5 = arith.constant 0.000000e+00 : f32
    %6 = vector.broadcast %cst_5 : f32 to vector<512x128xf32>
    %7 = arith.maximumf %5, %6 : vector<512x128xf32>
    %c0_6 = arith.constant 0 : index
    %c0_7 = arith.constant 0 : index
    %8 = vector.load %arg4[%c0_6, %c0_7] : memref<512x128xf32, #tpu.memory_space<vmem>>, vector<512x128xf32>
    tpu.vector_store %arg4[%c0_6, %c0_7], %7 {strides = array<i32>} : memref<512x128xf32, #tpu.memory_space<vmem>>, vector<512x128xf32>,
    return
  }
  func.func @transform_0(%arg0: i32) -> (i32, i32) {
    %c0_i32 = arith.constant 0 : i32
    %c0_i32_0 = arith.constant 0 : i32
    %c0_i32_1 = arith.constant 0 : i32
    return %c0_i32, %c0_i32_0 : i32, i32
  }
  func.func @transform_1(%arg0: i32) -> (i32, i32) {
    %c0_i32 = arith.constant 0 : i32
    %c0_i32_0 = arith.constant 0 : i32
    return %c0_i32, %arg0 : i32, i32
  }
  func.func @transform_2(%arg0: i32) -> (i32, i32) {
    %c0_i32 = arith.constant 0 : i32
    %c0_i32_0 = arith.constant 0 : i32
    return %c0_i32, %arg0 : i32, i32
  }
  func.func @transform_3(%arg0: i32) -> (i32, i32) {
    %c0_i32 = arith.constant 0 : i32
    %c0_i32_0 = arith.constant 0 : i32
    return %c0_i32, %arg0 : i32, i32
  }
}

</mosaic_0001>

<bundles_post_ra>
// kernel: tpu_custom_call.1
= control target key start
LH: loop header
LB: loop body
LE: loop exit
PB: predicated region body
PF: predicated region fallthrough
CT: control target
= control target key end

     0   :  { %8 = vsyncpa [#allocation3], 0  ;;  %s1201_s0 = inlined_call_operand.hbm [shape: bf16[512,128], index: 0, kind: input, shape index: {}]   ;;  %s1202_s1 = inlined_call_operand.hbm [shape: bf16[128,128], index: 1, kind: input, shape index: {}]   ;;  %s1203_s2 = inlined_call_operand.vmem [shape: f32[1,128], index: 2, kind: input, shape index: {}]   ;;  %s1204_s3 = inlined_call_operand.hbm [shape: f32[512,128], index: 3, kind: output, shape index: {}]  }
   0x1   :  { %9 = vsyncpa [#allocation6], 0 }
   0x2   :  { %10 = vsyncpa [#allocation4], 0  ;;  %s1096_s12 = smov [#allocation2]  }
   0x3   :  { %s16_s13 = sshll.u32 %s1096_s12, 4  ;;  %s17_s13 = int_to_ptr.vmem [resolvable:$true] %s16_s13 }
   0x4   :  { %s1038_s14 = scalar_lea.vmem %s17_s13, 4096  ;;  %p1043_p1 = scmp.lt.s32.totalorder %s17_s13, %s17_s13 }
   0x5   :  { %p1039_p0 = scmp.ne.s32.totalorder %s17_s13, %s1038_s14  ;;  %p1044_p2 = scmp.lt.s32.totalorder %s1038_s14, %s1038_s14 }
   0x7   :  { %p1045_p3 = por %p1044_p2, %p1043_p1 }
   0x9   :  { %p1046_p4 = pnand %p1045_p3, %p1039_p0 }
   0xb   :  { %1049 = shalt.err (!%p1046_p4)
}
   0xc   :  { %s1097_s15 = smov 64   ;;  %s1098_s16 = smov 4  }
   0xd   :  { %22 = dma.hbm_to_vmem [thread:$0]  %s1201_s0, 4096, %s17_s13, [#allocation3], %s1097_s15, %s1097_s15, %s1098_s16  }
   0xe   :  { %s1099_s19 = smov [#allocation5]  }
   0xf   :  { %s28_s20 = sshll.u32 %s1099_s19, 4  ;;  %s29_s20 = int_to_ptr.vmem [resolvable:$true] %s28_s20 }
  0x10   :  { %s1058_s21 = scalar_lea.vmem %s29_s20, 1024  ;;  %p1063_p6 = scmp.lt.s32.totalorder %s29_s20, %s29_s20 }
  0x11   :  { %p1059_p5 = scmp.ne.s32.totalorder %s29_s20, %s1058_s21  ;;  %p1064_p7 = scmp.lt.s32.totalorder %s1058_s21, %s1058_s21 }
  0x13   :  { %p1065_p8 = por %p1064_p7, %p1063_p6 }
  0x15   :  { %p1066_p9 = pnand %p1065_p8, %p1059_p5 }
  0x17   :  { %1069 = shalt.err (!%p1066_p9)
}
  0x18   :  { %34 = dma.hbm_to_vmem [thread:$0]  %s1202_s1, 1024, %s29_s20, [#allocation6], %s1097_s15, %s1097_s15, %s1098_s16  }
  0x19   :  { %1090 = dma.done.wait [#allocation3], 4096  }
  0x1a   :  { %1091 = vsyncadd [#allocation3], 4294963200 }
  0x1b   :  { %1092 = dma.done.wait [#allocation6], 1024  }
  0x1c   :  { %1093 = vsyncadd [#allocation6], 4294966272  ;;  %v990_v0 = vld [vmem:[#allocation5 + $0x38] sm:$0xff]   ;;  %v991_v1 = vld [vmem:[#allocation5 + $0x30] sm:$0xff]  }
  0x1d   :  { %887 = vmatprep.subr.bf16.mxu0 %v990_v0  ;;  %967 = vmatprep.subr.bf16.mxu1 %v990_v0  ;;  %v992_v2 = vld [vmem:[#allocation5 + $0x28] sm:$0xff]   ;;  %v993_v3 = vld [vmem:[#allocation5 + $0x20] sm:$0xff]   ;;  %v994_v6 = vld [vmem:[#allocation5 + $0x18] sm:$0xff]  }
  0x1e   :  { %888 = vmatpush3.bf16.msra.mxu0 %v990_v0  ;;  %975 = vmatpush3.bf16.msra.mxu1 %v990_v0  ;;  %v998_v4 = vld [vmem:[#allocation2] sm:$0xff]   ;;  %v995_v7 = vld [vmem:[#allocation5 + $0x10] sm:$0xff]   ;;  %v996_v8 = vld [vmem:[#allocation5 + $0x8] sm:$0xff]  }
  0x1f   :  { %889 = vmatprep.subr.bf16.mxu0 %v991_v1  ;;  %968 = vmatprep.subr.bf16.mxu1 %v991_v1  ;;  %v999_v5 = vld [vmem:[#allocation2 + $0x80] sm:$0xff]   ;;  %v1000_v10 = vld [vmem:[#allocation2 + $0x8] sm:$0xff]   ;;  %v1002_v12 = vld [vmem:[#allocation2 + $0x10] sm:$0xff]  }
  0x20   :  { %903 = vmatprep.mubr.bf16.mxu0 %v998_v4  ;;  %935 = vmatprep.mubr.bf16.mxu1 %v999_v5  ;;  %v997_v9 = vld [vmem:[#allocation5] sm:$0xff]   ;;  %v1001_v11 = vld [vmem:[#allocation2 + $0x88] sm:$0xff]   ;;  %v1003_v13 = vld [vmem:[#allocation2 + $0x90] sm:$0xff]  }
  0x21   :  { %v1004_v14 = vld [vmem:[#allocation2 + $0x18] sm:$0xff]   ;;  %v1006_v16 = vld [vmem:[#allocation2 + $0x20] sm:$0xff]   ;;  %v1008_v18 = vld [vmem:[#allocation2 + $0x28] sm:$0xff]  }
  0x22   :  { %890 = vmatpush3.bf16.msra.mxu0 %v991_v1  ;;  %976 = vmatpush3.bf16.msra.mxu1 %v991_v1  ;;  %v1005_v15 = vld [vmem:[#allocation2 + $0x98] sm:$0xff]   ;;  %v1007_v17 = vld [vmem:[#allocation2 + $0xa0] sm:$0xff]   ;;  %v1009_v19 = vld [vmem:[#allocation2 + $0xa8] sm:$0xff]  }
  0x23   :  { %891 = vmatprep.subr.bf16.mxu0 %v992_v2  ;;  %969 = vmatprep.subr.bf16.mxu1 %v992_v2  ;;  %v1010_v20 = vld [vmem:[#allocation2 + $0x30] sm:$0xff]   ;;  %v1012_v22 = vld [vmem:[#allocation2 + $0x38] sm:$0xff]   ;;  %v1014_v24 = vld [vmem:[#allocation2 + $0x40] sm:$0xff]  }
  0x24   :  { %v1011_v21 = vld [vmem:[#allocation2 + $0xb0] sm:$0xff]   ;;  %v1013_v23 = vld [vmem:[#allocation2 + $0xb8] sm:$0xff]   ;;  %v1015_v25 = vld [vmem:[#allocation2 + $0xc0] sm:$0xff]  }
  0x25   :  { %v1016_v26 = vld [vmem:[#allocation2 + $0x48] sm:$0xff]   ;;  %v1018_v28 = vld [vmem:[#allocation2 + $0x50] sm:$0xff]   ;;  %v1020_v30 = vld [vmem:[#allocation2 + $0x58] sm:$0xff]  }
  0x26   :  { %892 = vmatpush3.bf16.msra.mxu0 %v992_v2  ;;  %977 = vmatpush3.bf16.msra.mxu1 %v992_v2  ;;  %v1017_v27 = vld [vmem:[#allocation2 + $0xc8] sm:$0xff]   ;;  %v1019_v29 = vld [vmem:[#allocation2 + $0xd0] sm:$0xff]   ;;  %v1021_v31 = vld [vmem:[#allocation2 + $0xd8] sm:$0xff]  }
  0x27   :  { %893 = vmatprep.subr.bf16.mxu0 %v993_v3  ;;  %970 = vmatprep.subr.bf16.mxu1 %v993_v3  ;;  %v1022_v32 = vld [vmem:[#allocation2 + $0x60] sm:$0xff]   ;;  %v1024_v34 = vld [vmem:[#allocation2 + $0x68] sm:$0xff]   ;;  %v1026_v36 = vld [vmem:[#allocation2 + $0x70] sm:$0xff]  }
  0x28   :  { %v1023_v33 = vld [vmem:[#allocation2 + $0xe0] sm:$0xff]   ;;  %v1025_v35 = vld [vmem:[#allocation2 + $0xe8] sm:$0xff]   ;;  %v1027_v37 = vld [vmem:[#allocation2 + $0xf0] sm:$0xff]  }
  0x29   :  { %v1028_v38 = vld [vmem:[#allocation2 + $0x78] sm:$0xff]   ;;  %v1132_v40 = vld [vmem:[%s1203_s2] ss:$0 sm:$0xff]  ;;  %s1100_s2 = smov [#allocation7]  }
  0x2a   :  { %894 = vmatpush3.bf16.msra.mxu0 %v993_v3  ;;  %978 = vmatpush3.bf16.msra.mxu1 %v993_v3  ;;  %v1029_v39 = vld [vmem:[#allocation2 + $0xf8] sm:$0xff]   ;;  %s793_s24 = sshll.u32 %s1100_s2, 4  ;;  %s794_s24 = int_to_ptr.vmem [resolvable:$true] %s793_s24 }
  0x2b   :  { %895 = vmatprep.subr.bf16.mxu0 %v994_v6  ;;  %971 = vmatprep.subr.bf16.mxu1 %v994_v6  ;;  %s1070_s25 = scalar_lea.vmem %s794_s24, 8192  ;;  %p1075_p11 = scmp.lt.s32.totalorder %s794_s24, %s794_s24 }
  0x2c   :  { %p1071_p10 = scmp.ne.s32.totalorder %s794_s24, %s1070_s25  ;;  %p1076_p12 = scmp.lt.s32.totalorder %s1070_s25, %s1070_s25 }
  0x2e   :  { %896 = vmatpush3.bf16.msra.mxu0 %v994_v6  ;;  %979 = vmatpush3.bf16.msra.mxu1 %v994_v6  ;;  %p1077_p13 = por %p1076_p12, %p1075_p11 }
  0x2f   :  { %897 = vmatprep.subr.bf16.mxu0 %v995_v7  ;;  %972 = vmatprep.subr.bf16.mxu1 %v995_v7 }
  0x30   :  { %p1078_p0 = pnand %p1077_p13, %p1071_p10 }
  0x32   :  { %898 = vmatpush3.bf16.msra.mxu0 %v995_v7  ;;  %980 = vmatpush3.bf16.msra.mxu1 %v995_v7 }
  0x33   :  { %899 = vmatprep.subr.bf16.mxu0 %v996_v8  ;;  %973 = vmatprep.subr.bf16.mxu1 %v996_v8 }
  0x36   :  { %900 = vmatpush3.bf16.msra.mxu0 %v996_v8  ;;  %981 = vmatpush3.bf16.msra.mxu1 %v996_v8 }
  0x37   :  { %901 = vmatprep.subr.bf16.mxu0 %v997_v9  ;;  %974 = vmatprep.subr.bf16.mxu1 %v997_v9 }
  0x3a   :  { %902 = vmatpush3.bf16.msra.mxu0 %v997_v9  ;;  %982 = vmatpush3.bf16.msra.mxu1 %v997_v9 }
  0x3d   :  { %904 = vmatmul.mubr.bf16.vlgmr.msra.gmra.mxu0 %v1000_v10  ;;  %936 = vmatmul.mubr.bf16.vlgmr.msra.gmra.mxu1 %v1001_v11 }
  0x3e   :  { %907 = vmatprep.mubr.bf16.mxu0 %v1002_v12  ;;  %939 = vmatprep.mubr.bf16.mxu1 %v1003_v13 }
  0x45   :  { %908 = vmatmul.mubr.bf16.gmra.mxu0 %v1004_v14  ;;  %940 = vmatmul.mubr.bf16.gmra.mxu1 %v1005_v15 }
  0x46   :  { %911 = vmatprep.mubr.bf16.mxu0 %v1006_v16  ;;  %943 = vmatprep.mubr.bf16.mxu1 %v1007_v17 }
  0x4d   :  { %912 = vmatmul.mubr.bf16.gmra.mxu0 %v1008_v18  ;;  %944 = vmatmul.mubr.bf16.gmra.mxu1 %v1009_v19 }
  0x4e   :  { %915 = vmatprep.mubr.bf16.mxu0 %v1010_v20  ;;  %947 = vmatprep.mubr.bf16.mxu1 %v1011_v21 }
  0x55   :  { %916 = vmatmul.mubr.bf16.gmra.mxu0 %v1012_v22  ;;  %948 = vmatmul.mubr.bf16.gmra.mxu1 %v1013_v23 }
  0x56   :  { %919 = vmatprep.mubr.bf16.mxu0 %v1014_v24  ;;  %951 = vmatprep.mubr.bf16.mxu1 %v1015_v25 }
  0x5d   :  { %920 = vmatmul.mubr.bf16.gmra.mxu0 %v1016_v26  ;;  %952 = vmatmul.mubr.bf16.gmra.mxu1 %v1017_v27 }
  0x5e   :  { %923 = vmatprep.mubr.bf16.mxu0 %v1018_v28  ;;  %955 = vmatprep.mubr.bf16.mxu1 %v1019_v29 }
  0x65   :  { %924 = vmatmul.mubr.bf16.gmra.mxu0 %v1020_v30  ;;  %956 = vmatmul.mubr.bf16.gmra.mxu1 %v1021_v31 }
  0x66   :  { %927 = vmatprep.mubr.bf16.mxu0 %v1022_v32  ;;  %959 = vmatprep.mubr.bf16.mxu1 %v1023_v33 }
  0x6d   :  { %928 = vmatmul.mubr.bf16.gmra.mxu0 %v1024_v34  ;;  %960 = vmatmul.mubr.bf16.gmra.mxu1 %v1025_v35 }
  0x6e   :  { %931 = vmatprep.mubr.bf16.mxu0 %v1026_v36  ;;  %963 = vmatprep.mubr.bf16.mxu1 %v1027_v37 }
  0x75   :  { %932 = vmatmul.mubr.bf16.gmra.mxu0 %v1028_v38  ;;  %964 = vmatmul.mubr.bf16.gmra.mxu1 %v1029_v39 }
  0xfd   :  { %v905_v41 = vpop.f32.mrf.mxu0  ;;  %v937_v42 = vpop.f32.mrf.mxu1 }
  0xfe   :  { %v414_v43 = vadd.f32 %v905_v41, %v1132_v40  ;;  %v542_v44 = vadd.f32 %v937_v42, %v1132_v40 }
  0xff   :  { %v405_v45 = vpop.f32.mrf.mxu0  ;;  %v533_v46 = vpop.f32.mrf.mxu1 }
 0x100   :  { %v662_v47 = vmax.f32 %v414_v43, 0.0  ;;  %v694_v48 = vmax.f32 %v542_v44, 0.0  ;;  %v406_v49 = vadd.f32 %v1132_v40, %v405_v45  ;;  %v534_v50 = vadd.f32 %v1132_v40, %v533_v46 }
 0x101   :  { %v906_v51 = vpop.f32.mrf.mxu0  ;;  %v938_v52 = vpop.f32.mrf.mxu1 }
 0x102   :  { %726 = vst [vmem:[#allocation7 + $0x10] sm:$0xff] %v662_v47  ;;  %758 = vst [vmem:[#allocation7 + $0x110] sm:$0xff] %v694_v48  ;;  %v660_v53 = vmax.f32 %v406_v49, 0.0  ;;  %v692_v54 = vmax.f32 %v534_v50, 0.0  ;;  %v417_v55 = vadd.f32 %v906_v51, %v1132_v40  ;;  %v545_v56 = vadd.f32 %v938_v52, %v1132_v40 }
 0x103   :  { %v408_v57 = vpop.f32.mrf.mxu0  ;;  %v536_v58 = vpop.f32.mrf.mxu1 }
 0x104   :  { %724 = vst [vmem:[#allocation7] sm:$0xff] %v660_v53  ;;  %756 = vst [vmem:[#allocation7 + $0x100] sm:$0xff] %v692_v54  ;;  %v663_v59 = vmax.f32 %v417_v55, 0.0  ;;  %v695_v60 = vmax.f32 %v545_v56, 0.0  ;;  %v409_v61 = vadd.f32 %v1132_v40, %v408_v57  ;;  %v537_v62 = vadd.f32 %v1132_v40, %v536_v58 }
 0x105   :  { %v909_v63 = vpop.f32.mrf.mxu0  ;;  %v941_v0 = vpop.f32.mrf.mxu1 }
 0x106   :  { %727 = vst [vmem:[#allocation7 + $0x18] sm:$0xff] %v663_v59  ;;  %759 = vst [vmem:[#allocation7 + $0x118] sm:$0xff] %v695_v60  ;;  %v661_v1 = vmax.f32 %v409_v61, 0.0  ;;  %v693_v2 = vmax.f32 %v537_v62, 0.0  ;;  %v430_v3 = vadd.f32 %v909_v63, %v1132_v40  ;;  %v558_v4 = vadd.f32 %v941_v0, %v1132_v40 }
 0x107   :  { %v421_v5 = vpop.f32.mrf.mxu0  ;;  %v549_v6 = vpop.f32.mrf.mxu1 }
 0x108   :  { %725 = vst [vmem:[#allocation7 + $0x8] sm:$0xff] %v661_v1  ;;  %757 = vst [vmem:[#allocation7 + $0x108] sm:$0xff] %v693_v2  ;;  %v666_v7 = vmax.f32 %v430_v3, 0.0  ;;  %v698_v8 = vmax.f32 %v558_v4, 0.0  ;;  %v422_v9 = vadd.f32 %v1132_v40, %v421_v5  ;;  %v550_v10 = vadd.f32 %v1132_v40, %v549_v6 }
 0x109   :  { %v910_v11 = vpop.f32.mrf.mxu0  ;;  %v942_v12 = vpop.f32.mrf.mxu1 }
 0x10a   :  { %730 = vst [vmem:[#allocation7 + $0x30] sm:$0xff] %v666_v7  ;;  %762 = vst [vmem:[#allocation7 + $0x130] sm:$0xff] %v698_v8  ;;  %v664_v13 = vmax.f32 %v422_v9, 0.0  ;;  %v696_v14 = vmax.f32 %v550_v10, 0.0  ;;  %v433_v15 = vadd.f32 %v910_v11, %v1132_v40  ;;  %v561_v16 = vadd.f32 %v942_v12, %v1132_v40 }
 0x10b   :  { %v424_v17 = vpop.f32.mrf.mxu0  ;;  %v552_v18 = vpop.f32.mrf.mxu1 }
 0x10c   :  { %728 = vst [vmem:[#allocation7 + $0x20] sm:$0xff] %v664_v13  ;;  %760 = vst [vmem:[#allocation7 + $0x120] sm:$0xff] %v696_v14  ;;  %v667_v19 = vmax.f32 %v433_v15, 0.0  ;;  %v699_v20 = vmax.f32 %v561_v16, 0.0  ;;  %v425_v21 = vadd.f32 %v1132_v40, %v424_v17  ;;  %v553_v22 = vadd.f32 %v1132_v40, %v552_v18 }
 0x10d   :  { %v913_v23 = vpop.f32.mrf.mxu0  ;;  %v945_v24 = vpop.f32.mrf.mxu1 }
 0x10e   :  { %731 = vst [vmem:[#allocation7 + $0x38] sm:$0xff] %v667_v19  ;;  %763 = vst [vmem:[#allocation7 + $0x138] sm:$0xff] %v699_v20  ;;  %v665_v25 = vmax.f32 %v425_v21, 0.0  ;;  %v697_v26 = vmax.f32 %v553_v22, 0.0  ;;  %v446_v27 = vadd.f32 %v913_v23, %v1132_v40  ;;  %v574_v28 = vadd.f32 %v945_v24, %v1132_v40 }
 0x10f   :  { %v437_v29 = vpop.f32.mrf.mxu0  ;;  %v565_v30 = vpop.f32.mrf.mxu1 }
 0x110   :  { %729 = vst [vmem:[#allocation7 + $0x28] sm:$0xff] %v665_v25  ;;  %761 = vst [vmem:[#allocation7 + $0x128] sm:$0xff] %v697_v26  ;;  %v670_v31 = vmax.f32 %v446_v27, 0.0  ;;  %v702_v32 = vmax.f32 %v574_v28, 0.0  ;;  %v438_v33 = vadd.f32 %v1132_v40, %v437_v29  ;;  %v566_v34 = vadd.f32 %v1132_v40, %v565_v30 }
 0x111   :  { %v914_v35 = vpop.f32.mrf.mxu0  ;;  %v946_v36 = vpop.f32.mrf.mxu1 }
 0x112   :  { %734 = vst [vmem:[#allocation7 + $0x50] sm:$0xff] %v670_v31  ;;  %766 = vst [vmem:[#allocation7 + $0x150] sm:$0xff] %v702_v32  ;;  %v668_v37 = vmax.f32 %v438_v33, 0.0  ;;  %v700_v38 = vmax.f32 %v566_v34, 0.0  ;;  %v449_v39 = vadd.f32 %v914_v35, %v1132_v40  ;;  %v577_v41 = vadd.f32 %v946_v36, %v1132_v40 }
 0x113   :  { %v440_v42 = vpop.f32.mrf.mxu0  ;;  %v568_v43 = vpop.f32.mrf.mxu1 }
 0x114   :  { %732 = vst [vmem:[#allocation7 + $0x40] sm:$0xff] %v668_v37  ;;  %764 = vst [vmem:[#allocation7 + $0x140] sm:$0xff] %v700_v38  ;;  %v671_v44 = vmax.f32 %v449_v39, 0.0  ;;  %v703_v45 = vmax.f32 %v577_v41, 0.0  ;;  %v441_v46 = vadd.f32 %v1132_v40, %v440_v42  ;;  %v569_v47 = vadd.f32 %v1132_v40, %v568_v43 }
 0x115   :  { %v917_v48 = vpop.f32.mrf.mxu0  ;;  %v949_v49 = vpop.f32.mrf.mxu1 }
 0x116   :  { %735 = vst [vmem:[#allocation7 + $0x58] sm:$0xff] %v671_v44  ;;  %767 = vst [vmem:[#allocation7 + $0x158] sm:$0xff] %v703_v45  ;;  %v669_v50 = vmax.f32 %v441_v46, 0.0  ;;  %v701_v51 = vmax.f32 %v569_v47, 0.0  ;;  %v462_v52 = vadd.f32 %v917_v48, %v1132_v40  ;;  %v590_v53 = vadd.f32 %v949_v49, %v1132_v40 }
 0x117   :  { %v453_v54 = vpop.f32.mrf.mxu0  ;;  %v581_v55 = vpop.f32.mrf.mxu1 }
 0x118   :  { %733 = vst [vmem:[#allocation7 + $0x48] sm:$0xff] %v669_v50  ;;  %765 = vst [vmem:[#allocation7 + $0x148] sm:$0xff] %v701_v51  ;;  %v674_v56 = vmax.f32 %v462_v52, 0.0  ;;  %v706_v57 = vmax.f32 %v590_v53, 0.0  ;;  %v454_v58 = vadd.f32 %v1132_v40, %v453_v54  ;;  %v582_v59 = vadd.f32 %v1132_v40, %v581_v55 }
 0x119   :  { %v918_v60 = vpop.f32.mrf.mxu0  ;;  %v950_v61 = vpop.f32.mrf.mxu1 }
 0x11a   :  { %738 = vst [vmem:[#allocation7 + $0x70] sm:$0xff] %v674_v56  ;;  %770 = vst [vmem:[#allocation7 + $0x170] sm:$0xff] %v706_v57  ;;  %v672_v62 = vmax.f32 %v454_v58, 0.0  ;;  %v704_v63 = vmax.f32 %v582_v59, 0.0  ;;  %v465_v0 = vadd.f32 %v918_v60, %v1132_v40  ;;  %v593_v1 = vadd.f32 %v950_v61, %v1132_v40 }
 0x11b   :  { %v456_v2 = vpop.f32.mrf.mxu0  ;;  %v584_v3 = vpop.f32.mrf.mxu1 }
 0x11c   :  { %736 = vst [vmem:[#allocation7 + $0x60] sm:$0xff] %v672_v62  ;;  %768 = vst [vmem:[#allocation7 + $0x160] sm:$0xff] %v704_v63  ;;  %v675_v4 = vmax.f32 %v465_v0, 0.0  ;;  %v707_v5 = vmax.f32 %v593_v1, 0.0  ;;  %v457_v6 = vadd.f32 %v1132_v40, %v456_v2  ;;  %v585_v7 = vadd.f32 %v1132_v40, %v584_v3 }
 0x11d   :  { %v921_v8 = vpop.f32.mrf.mxu0  ;;  %v953_v9 = vpop.f32.mrf.mxu1 }
 0x11e   :  { %739 = vst [vmem:[#allocation7 + $0x78] sm:$0xff] %v675_v4  ;;  %771 = vst [vmem:[#allocation7 + $0x178] sm:$0xff] %v707_v5  ;;  %v673_v10 = vmax.f32 %v457_v6, 0.0  ;;  %v705_v11 = vmax.f32 %v585_v7, 0.0  ;;  %v478_v12 = vadd.f32 %v921_v8, %v1132_v40  ;;  %v606_v13 = vadd.f32 %v953_v9, %v1132_v40 }
 0x11f   :  { %v469_v14 = vpop.f32.mrf.mxu0  ;;  %v597_v15 = vpop.f32.mrf.mxu1 }
 0x120   :  { %737 = vst [vmem:[#allocation7 + $0x68] sm:$0xff] %v673_v10  ;;  %769 = vst [vmem:[#allocation7 + $0x168] sm:$0xff] %v705_v11  ;;  %v678_v16 = vmax.f32 %v478_v12, 0.0  ;;  %v710_v17 = vmax.f32 %v606_v13, 0.0  ;;  %v470_v18 = vadd.f32 %v1132_v40, %v469_v14  ;;  %v598_v19 = vadd.f32 %v1132_v40, %v597_v15 }
 0x121   :  { %v922_v20 = vpop.f32.mrf.mxu0  ;;  %v954_v21 = vpop.f32.mrf.mxu1 }
 0x122   :  { %742 = vst [vmem:[#allocation7 + $0x90] sm:$0xff] %v678_v16  ;;  %774 = vst [vmem:[#allocation7 + $0x190] sm:$0xff] %v710_v17  ;;  %v676_v22 = vmax.f32 %v470_v18, 0.0  ;;  %v708_v23 = vmax.f32 %v598_v19, 0.0  ;;  %v481_v24 = vadd.f32 %v922_v20, %v1132_v40  ;;  %v609_v25 = vadd.f32 %v954_v21, %v1132_v40 }
 0x123   :  { %v472_v26 = vpop.f32.mrf.mxu0  ;;  %v600_v27 = vpop.f32.mrf.mxu1 }
 0x124   :  { %740 = vst [vmem:[#allocation7 + $0x80] sm:$0xff] %v676_v22  ;;  %772 = vst [vmem:[#allocation7 + $0x180] sm:$0xff] %v708_v23  ;;  %v679_v28 = vmax.f32 %v481_v24, 0.0  ;;  %v711_v29 = vmax.f32 %v609_v25, 0.0  ;;  %v473_v30 = vadd.f32 %v1132_v40, %v472_v26  ;;  %v601_v31 = vadd.f32 %v1132_v40, %v600_v27 }
 0x125   :  { %v925_v32 = vpop.f32.mrf.mxu0  ;;  %v957_v33 = vpop.f32.mrf.mxu1 }
 0x126   :  { %743 = vst [vmem:[#allocation7 + $0x98] sm:$0xff] %v679_v28  ;;  %775 = vst [vmem:[#allocation7 + $0x198] sm:$0xff] %v711_v29  ;;  %v677_v34 = vmax.f32 %v473_v30, 0.0  ;;  %v709_v35 = vmax.f32 %v601_v31, 0.0  ;;  %v494_v36 = vadd.f32 %v925_v32, %v1132_v40  ;;  %v622_v37 = vadd.f32 %v957_v33, %v1132_v40 }
 0x127   :  { %v485_v38 = vpop.f32.mrf.mxu0  ;;  %v613_v39 = vpop.f32.mrf.mxu1 }
 0x128   :  { %741 = vst [vmem:[#allocation7 + $0x88] sm:$0xff] %v677_v34  ;;  %773 = vst [vmem:[#allocation7 + $0x188] sm:$0xff] %v709_v35  ;;  %v682_v41 = vmax.f32 %v494_v36, 0.0  ;;  %v714_v42 = vmax.f32 %v622_v37, 0.0  ;;  %v486_v43 = vadd.f32 %v1132_v40, %v485_v38  ;;  %v614_v44 = vadd.f32 %v1132_v40, %v613_v39 }
 0x129   :  { %v926_v45 = vpop.f32.mrf.mxu0  ;;  %v958_v46 = vpop.f32.mrf.mxu1 }
 0x12a   :  { %746 = vst [vmem:[#allocation7 + $0xb0] sm:$0xff] %v682_v41  ;;  %778 = vst [vmem:[#allocation7 + $0x1b0] sm:$0xff] %v714_v42  ;;  %v680_v47 = vmax.f32 %v486_v43, 0.0  ;;  %v712_v48 = vmax.f32 %v614_v44, 0.0  ;;  %v497_v49 = vadd.f32 %v926_v45, %v1132_v40  ;;  %v625_v50 = vadd.f32 %v958_v46, %v1132_v40 }
 0x12b   :  { %v488_v51 = vpop.f32.mrf.mxu0  ;;  %v616_v52 = vpop.f32.mrf.mxu1 }
 0x12c   :  { %744 = vst [vmem:[#allocation7 + $0xa0] sm:$0xff] %v680_v47  ;;  %776 = vst [vmem:[#allocation7 + $0x1a0] sm:$0xff] %v712_v48  ;;  %v683_v53 = vmax.f32 %v497_v49, 0.0  ;;  %v715_v54 = vmax.f32 %v625_v50, 0.0  ;;  %v489_v55 = vadd.f32 %v1132_v40, %v488_v51  ;;  %v617_v56 = vadd.f32 %v1132_v40, %v616_v52 }
 0x12d   :  { %v929_v57 = vpop.f32.mrf.mxu0  ;;  %v961_v58 = vpop.f32.mrf.mxu1 }
 0x12e   :  { %747 = vst [vmem:[#allocation7 + $0xb8] sm:$0xff] %v683_v53  ;;  %779 = vst [vmem:[#allocation7 + $0x1b8] sm:$0xff] %v715_v54  ;;  %v681_v59 = vmax.f32 %v489_v55, 0.0  ;;  %v713_v60 = vmax.f32 %v617_v56, 0.0  ;;  %v510_v61 = vadd.f32 %v929_v57, %v1132_v40  ;;  %v638_v62 = vadd.f32 %v961_v58, %v1132_v40 }
 0x12f   :  { %v501_v63 = vpop.f32.mrf.mxu0  ;;  %v629_v0 = vpop.f32.mrf.mxu1 }
 0x130   :  { %745 = vst [vmem:[#allocation7 + $0xa8] sm:$0xff] %v681_v59  ;;  %777 = vst [vmem:[#allocation7 + $0x1a8] sm:$0xff] %v713_v60  ;;  %v686_v1 = vmax.f32 %v510_v61, 0.0  ;;  %v718_v2 = vmax.f32 %v638_v62, 0.0  ;;  %v502_v3 = vadd.f32 %v1132_v40, %v501_v63  ;;  %v630_v4 = vadd.f32 %v1132_v40, %v629_v0 }
 0x131   :  { %v930_v5 = vpop.f32.mrf.mxu0  ;;  %v962_v6 = vpop.f32.mrf.mxu1 }
 0x132   :  { %750 = vst [vmem:[#allocation7 + $0xd0] sm:$0xff] %v686_v1  ;;  %782 = vst [vmem:[#allocation7 + $0x1d0] sm:$0xff] %v718_v2  ;;  %v684_v7 = vmax.f32 %v502_v3, 0.0  ;;  %v716_v8 = vmax.f32 %v630_v4, 0.0  ;;  %v513_v9 = vadd.f32 %v930_v5, %v1132_v40  ;;  %v641_v10 = vadd.f32 %v962_v6, %v1132_v40 }
 0x133   :  { %v504_v11 = vpop.f32.mrf.mxu0  ;;  %v632_v12 = vpop.f32.mrf.mxu1 }
 0x134   :  { %748 = vst [vmem:[#allocation7 + $0xc0] sm:$0xff] %v684_v7  ;;  %780 = vst [vmem:[#allocation7 + $0x1c0] sm:$0xff] %v716_v8  ;;  %v687_v13 = vmax.f32 %v513_v9, 0.0  ;;  %v719_v14 = vmax.f32 %v641_v10, 0.0  ;;  %v505_v15 = vadd.f32 %v1132_v40, %v504_v11  ;;  %v633_v16 = vadd.f32 %v1132_v40, %v632_v12 }
 0x135   :  { %v933_v17 = vpop.f32.mrf.mxu0  ;;  %v965_v18 = vpop.f32.mrf.mxu1 }
 0x136   :  { %751 = vst [vmem:[#allocation7 + $0xd8] sm:$0xff] %v687_v13  ;;  %783 = vst [vmem:[#allocation7 + $0x1d8] sm:$0xff] %v719_v14  ;;  %v685_v19 = vmax.f32 %v505_v15, 0.0  ;;  %v717_v20 = vmax.f32 %v633_v16, 0.0  ;;  %v526_v21 = vadd.f32 %v933_v17, %v1132_v40  ;;  %v654_v22 = vadd.f32 %v965_v18, %v1132_v40 }
 0x137   :  { %v517_v23 = vpop.f32.mrf.mxu0  ;;  %v645_v24 = vpop.f32.mrf.mxu1 }
 0x138   :  { %749 = vst [vmem:[#allocation7 + $0xc8] sm:$0xff] %v685_v19  ;;  %781 = vst [vmem:[#allocation7 + $0x1c8] sm:$0xff] %v717_v20  ;;  %v690_v25 = vmax.f32 %v526_v21, 0.0  ;;  %v722_v26 = vmax.f32 %v654_v22, 0.0  ;;  %v518_v27 = vadd.f32 %v1132_v40, %v517_v23  ;;  %v646_v28 = vadd.f32 %v1132_v40, %v645_v24 }
 0x139   :  { %v934_v29 = vpop.f32.mrf.mxu0  ;;  %v966_v30 = vpop.f32.mrf.mxu1 }
 0x13a   :  { %754 = vst [vmem:[#allocation7 + $0xf0] sm:$0xff] %v690_v25  ;;  %786 = vst [vmem:[#allocation7 + $0x1f0] sm:$0xff] %v722_v26  ;;  %v688_v31 = vmax.f32 %v518_v27, 0.0  ;;  %v720_v32 = vmax.f32 %v646_v28, 0.0  ;;  %v529_v33 = vadd.f32 %v934_v29, %v1132_v40  ;;  %v657_v34 = vadd.f32 %v966_v30, %v1132_v40 }
 0x13b   :  { %v520_v35 = vpop.f32.mrf.mxu0  ;;  %v648_v36 = vpop.f32.mrf.mxu1 }
 0x13c   :  { %752 = vst [vmem:[#allocation7 + $0xe0] sm:$0xff] %v688_v31  ;;  %784 = vst [vmem:[#allocation7 + $0x1e0] sm:$0xff] %v720_v32  ;;  %v691_v37 = vmax.f32 %v529_v33, 0.0  ;;  %v723_v38 = vmax.f32 %v657_v34, 0.0  ;;  %v521_v39 = vadd.f32 %v1132_v40, %v520_v35  ;;  %v649_v41 = vadd.f32 %v1132_v40, %v648_v36 }
 0x13e   :  { %755 = vst [vmem:[#allocation7 + $0xf8] sm:$0xff] %v691_v37  ;;  %787 = vst [vmem:[#allocation7 + $0x1f8] sm:$0xff] %v723_v38  ;;  %v689_v42 = vmax.f32 %v521_v39, 0.0  ;;  %v721_v43 = vmax.f32 %v649_v41, 0.0 }
 0x140   :  { %753 = vst [vmem:[#allocation7 + $0xe8] sm:$0xff] %v689_v42  ;;  %785 = vst [vmem:[#allocation7 + $0x1e8] sm:$0xff] %v721_v43 }
 0x141   :  { %1081 = shalt.err (!%p1078_p0)
}
 0x142   :  { %s1101_s26 = smov 128   ;;  %s1102_s27 = smov 8  }
 0x143   :  { %799 = dma.vmem_to_hbm [thread:$0]  %s794_s24, 8192, %s1204_s3, [#allocation4], %s1101_s26, %s1101_s26, %s1102_s27  }
 0x144   :  { %1094 = dma.done.wait [#allocation4], 8192  }
 0x145   :  { %1095 = vsyncadd [#allocation4], 4294959104 }
 0x146   :  { %803 = vsyncpa [#allocation3], 1 }
 0x147   :  { %804 = vsyncpa [#allocation6], 1 }
 0x148   :  { %805 = vsyncpa [#allocation4], 1 }

</bundles_post_ra>
